<compile_context>
chip_gen: v7x
topology: tpu7x:2x2x1
jax: 0.10.0
libtpu: 0.0.40
codegen_flags: <defaults>
</compile_context>

<pallas_src>
import jax
import jax.numpy as jnp
from jax.experimental import pallas as pl
from jax.experimental.pallas import tpu as pltpu

# MXU operand dtype (weights / activations fed to the dots). Accumulation and
# all elementwise gate math stay in float32.
COMPUTE_DTYPE = jnp.bfloat16

# Scoped VMEM limit: above the 32 MiB default, below v7x's 64 MiB physical.
_VMEM_LIMIT = 48 * 1024 * 1024


def _pick_tile(n, candidates=(256, 128, 64, 32, 16, 8)):
    """Largest candidate that evenly divides n (falls back to n itself)."""
    for c in candidates:
        if n % c == 0:
            return c
    return n


def _activate_gates(gates, hidden_dim):
    """Gate nonlinearities with a SINGLE EUP tanh pass over all 4H lanes.

    sigmoid(x) = 0.5 * tanh(0.5 * x) + 0.5, so the sigmoid lanes (i|f|o) are
    pre-scaled by 0.5, one whole-tensor tanh runs on the EUP, and a select/fma
    (riding otherwise-idle VPU slots) fixes up the sigmoid lanes.
    Returns the (i, f, o, c~) gate slices.
    """
    H = hidden_dim
    lane = jax.lax.broadcasted_iota(jnp.int32, gates.shape, dimension=1)
    is_sig = lane < 3 * H
    t = jnp.tanh(jnp.where(is_sig, 0.5 * gates, gates))
    act = jnp.where(is_sig, 0.5 * t + 0.5, t)
    return act[:, 0:H], act[:, H:2 * H], act[:, 2 * H:3 * H], act[:, 3 * H:4 * H]


# ---------------------------------------------------------------------------
# Single-step cell (matches the torch module's forward exactly).
# ---------------------------------------------------------------------------
def _lstm_cell_kernel(x_ref, h_ref, c_ref, wx_ref, wh_ref, b_ref,
                      h_out_ref, c_out_ref):
    """One LSTM step for one batch tile: two bf16 MXU dots -> f32 gate math."""
    H = c_ref.shape[-1]
    gates = (
        jnp.dot(x_ref[...].astype(COMPUTE_DTYPE), wx_ref[...],
                preferred_element_type=jnp.float32)
        + jnp.dot(h_ref[...].astype(COMPUTE_DTYPE), wh_ref[...],
                  preferred_element_type=jnp.float32)
        + b_ref[...]                       # f32 bias, added outside the MXU
    )
    i_g, f_g, o_g, c_cand = _activate_gates(gates, H)
    c_new = f_g * c_ref[...] + i_g * c_cand
    h_new = o_g * jnp.tanh(c_new)
    h_out_ref[...] = h_new.astype(h_out_ref.dtype)
    c_out_ref[...] = c_new.astype(c_out_ref.dtype)


@jax.jit
def lstm_cell(x, h_1, c_1, wx, wh, b):
    """Single LSTM cell step. Returns (h, c), each [B, H] float32."""
    B, in_dim = x.shape
    H = h_1.shape[-1]
    bt = _pick_tile(B)
    grid = (B // bt,)

    # In production the weights would be stored pre-cast to bf16; casting here
    # keeps the script self-contained with f32 parameters.
    wx_c = wx.astype(COMPUTE_DTYPE)
    wh_c = wh.astype(COMPUTE_DTYPE)
    b2 = b.reshape(1, 4 * H).astype(jnp.float32)

    h_out, c_out = pl.pallas_call(
        _lstm_cell_kernel,
        out_shape=(jax.ShapeDtypeStruct((B, H), jnp.float32),
                   jax.ShapeDtypeStruct((B, H), jnp.float32)),
        grid=grid,
        in_specs=[
            pl.BlockSpec((bt, in_dim), lambda i: (i, 0)),      # x
            pl.BlockSpec((bt, H), lambda i: (i, 0)),           # h_prev
            pl.BlockSpec((bt, H), lambda i: (i, 0)),           # c_prev
            pl.BlockSpec((in_dim, 4 * H), lambda i: (0, 0)),   # Wx (bf16)
            pl.BlockSpec((H, 4 * H), lambda i: (0, 0)),        # Wh (bf16)
            pl.BlockSpec((1, 4 * H), lambda i: (0, 0)),        # bias (f32)
        ],
        out_specs=(pl.BlockSpec((bt, H), lambda i: (i, 0)),
                   pl.BlockSpec((bt, H), lambda i: (i, 0))),
        compiler_params=pltpu.CompilerParams(
            dimension_semantics=("parallel",),
            vmem_limit_bytes=_VMEM_LIMIT),
    )(x, h_1, c_1, wx_c, wh_c, b2)
    return h_out, c_out


# ---------------------------------------------------------------------------
# Whole-sequence kernel: recurrence lives inside one pallas_call.
# ---------------------------------------------------------------------------
def _lstm_seq_kernel(xproj_ref, h0_ref, c0_ref, wh_ref,
                     hs_ref, hfin_ref, cfin_ref, h_scr, c_scr):
    """Tt timesteps per grid iteration; h/c carried in VMEM scratch."""
    H = h0_ref.shape[-1]
    Tt = xproj_ref.shape[0]
    j = pl.program_id(1)

    @pl.when(j == 0)
    def _():
        h_scr[...] = h0_ref[...]
        c_scr[...] = c0_ref[...]

    wh = wh_ref[...]          # bf16 Wh, VMEM-resident across the whole grid
    h = h_scr[...]            # f32 carried state
    c = c_scr[...]

    # Static unroll over the time block (Tt is small & static); only the
    # h @ Wh dot is on the serial critical path — the x path was hoisted out.
    for tt in range(Tt):
        # NOTE: h is rounded to bf16 for the MXU each step, so a small error
        # compounds over long T; c stays f32 throughout.
        gates = xproj_ref[tt] + jnp.dot(
            h.astype(wh.dtype), wh, preferred_element_type=jnp.float32)
        i_g, f_g, o_g, c_cand = _activate_gates(gates, H)
        c = f_g * c + i_g * c_cand
        h = o_g * jnp.tanh(c)
        hs_ref[tt] = h.astype(hs_ref.dtype)

    h_scr[...] = h
    c_scr[...] = c

    # Final (h_T, c_T) written back exactly once (no per-step c writeback).
    @pl.when(j == pl.num_programs(1) - 1)
    def _():
        hfin_ref[...] = h.astype(hfin_ref.dtype)
        cfin_ref[...] = c.astype(cfin_ref.dtype)


@jax.jit
def lstm_sequence(xs, h0, c0, wx, wh, b):
    """Run the cell over a whole sequence inside ONE pallas_call.

    xs: [T, B, in_dim]. Returns (hs [T,B,H], h_T [B,H], c_T [B,H]), all f32.
    The x projection is precomputed as one large matmul; inside the kernel the
    recurrence only does h @ Wh per step, with Wh VMEM-resident across T.
    """
    T, B, in_dim = xs.shape
    H = h0.shape[-1]
    bt = _pick_tile(B)
    Tt = _pick_tile(T, candidates=(8, 4, 2))
    grid = (B // bt, T // Tt)

    # Hoisted input projection: one big [T*B, in] x [in, 4H] MXU matmul,
    # independent of the recurrence; bias folded in here in f32.
    xproj = jnp.dot(
        xs.reshape(T * B, in_dim).astype(COMPUTE_DTYPE),
        wx.astype(COMPUTE_DTYPE),
        preferred_element_type=jnp.float32,
    ).reshape(T, B, 4 * H) + b.reshape(1, 1, 4 * H).astype(jnp.float32)
    wh_c = wh.astype(COMPUTE_DTYPE)

    # TODO(synk): for production H where bf16 Wh nears the scoped VMEM limit,
    # single-buffer the resident specs (pipeline_mode=pl.Buffered(1)) or tile
    # the 4H axis of Wh.
    hs, h_fin, c_fin = pl.pallas_call(
        _lstm_seq_kernel,
        out_shape=(jax.ShapeDtypeStruct((T, B, H), jnp.float32),
                   jax.ShapeDtypeStruct((B, H), jnp.float32),
                   jax.ShapeDtypeStruct((B, H), jnp.float32)),
        grid=grid,
        in_specs=[
            pl.BlockSpec((Tt, bt, 4 * H), lambda i, j: (j, i, 0)),  # xproj_t
            pl.BlockSpec((bt, H), lambda i, j: (i, 0)),             # h0
            pl.BlockSpec((bt, H), lambda i, j: (i, 0)),             # c0
            pl.BlockSpec((H, 4 * H), lambda i, j: (0, 0)),          # Wh resident
        ],
        out_specs=(
            pl.BlockSpec((Tt, bt, H), lambda i, j: (j, i, 0)),      # hs
            pl.BlockSpec((bt, H), lambda i, j: (i, 0)),             # h_T
            pl.BlockSpec((bt, H), lambda i, j: (i, 0)),             # c_T
        ),
        scratch_shapes=[
            pltpu.VMEM((bt, H), jnp.float32),   # carried h
            pltpu.VMEM((bt, H), jnp.float32),   # carried c
        ],
        compiler_params=pltpu.CompilerParams(
            dimension_semantics=("parallel", "arbitrary"),
            vmem_limit_bytes=_VMEM_LIMIT),
    )(xproj, h0, c0, wh_c)
    return hs, h_fin, c_fin


# ---------------------------------------------------------------------------
# Parameters and plain-JAX references.
# ---------------------------------------------------------------------------
def make_params(key, in_dim, hidden_dim):
    """Synthetic parameters. Gate order along the 4H axis: [i | f | o | c~]."""
    k1, k2, k3, k4 = jax.random.split(key, 4)
    scale = 0.1
    wx = scale * jax.random.normal(k1, (in_dim, 4 * hidden_dim), jnp.float32)
    wh = scale * jax.random.normal(k2, (hidden_dim, 4 * hidden_dim), jnp.float32)
    b = scale * (jax.random.normal(k3, (4 * hidden_dim,), jnp.float32)
                 + jax.random.normal(k4, (4 * hidden_dim,), jnp.float32))
    return wx, wh, b


def lstm_cell_ref(x, h_1, c_1, wx, wh, b):
    """Plain-JAX f32 reference matching the torch forward."""
    H = h_1.shape[-1]
    gates = x @ wx + h_1 @ wh + b
    i = jax.nn.sigmoid(gates[:, 0 * H:1 * H])
    f = jax.nn.sigmoid(gates[:, 1 * H:2 * H])
    o = jax.nn.sigmoid(gates[:, 2 * H:3 * H])
    c_ = jnp.tanh(gates[:, 3 * H:4 * H])
    c = f * c_1 + i * c_
    h = o * jnp.tanh(c)
    return h, c


def lstm_sequence_ref(xs, h0, c0, wx, wh, b):
    def step(carry, x):
        h, c = lstm_cell_ref(x, carry[0], carry[1], wx, wh, b)
        return (h, c), (h, c)
    _, (hs, cs) = jax.lax.scan(step, (h0, c0), xs)
    return hs, cs


if __name__ == "__main__":
    B, in_dim, hidden_dim, T = 8, 16, 32, 8

    key = jax.random.PRNGKey(0)
    k_x, k_h, k_c, k_p, k_s = jax.random.split(key, 5)
    x = jax.random.normal(k_x, (B, in_dim), jnp.float32)
    h_1 = jax.random.normal(k_h, (B, hidden_dim), jnp.float32)
    c_1 = jax.random.normal(k_c, (B, hidden_dim), jnp.float32)
    xs = jax.random.normal(k_s, (T, B, in_dim), jnp.float32)
    wx, wh, b = make_params(k_p, in_dim, hidden_dim)

    # --- single-step cell (the torch module's forward) ---
    h_out, c_out = lstm_cell(x, h_1, c_1, wx, wh, b)
    jax.block_until_ready((h_out, c_out))
    h_ref, c_ref = lstm_cell_ref(x, h_1, c_1, wx, wh, b)
    # bf16 MXU operands vs. pure-f32 reference -> loose-but-meaningful bound.
    assert float(jnp.max(jnp.abs(h_out - h_ref))) < 5e-2, "cell h mismatch"
    assert float(jnp.max(jnp.abs(c_out - c_ref))) < 5e-2, "cell c mismatch"

    # --- whole sequence inside one pallas_call (Wh VMEM-resident) ---
    hs, h_T, c_T = lstm_sequence(xs, h_1, c_1, wx, wh, b)
    jax.block_until_ready((hs, h_T, c_T))
    hs_ref, cs_ref = lstm_sequence_ref(xs, h_1, c_1, wx, wh, b)
    assert float(jnp.max(jnp.abs(hs - hs_ref))) < 1e-1, "seq h mismatch"
    assert float(jnp.max(jnp.abs(h_T - hs_ref[-1]))) < 1e-1, "seq h_T mismatch"
    assert float(jnp.max(jnp.abs(c_T - cs_ref[-1]))) < 1e-1, "seq c_T mismatch"

    print("KERNEL_OK")
</pallas_src>

<mosaic_0001>
module attributes {stable_mosaic.version = 11 : i64} {
  func.func @_lstm_cell_kernel(%arg0: i32, %arg1: memref<8x16xf32, #tpu.memory_space<vmem>>, %arg2: memref<8x32xf32, #tpu.memory_space<vmem>>, %arg3: memref<8x32xf32, #tpu.memory_space<vmem>>, %arg4: memref<16x128xbf16, #tpu.memory_space<vmem>>, %arg5: memref<32x128xbf16, #tpu.memory_space<vmem>>, %arg6: memref<1x128xf32, #tpu.memory_space<vmem>>, %arg7: memref<8x32xf32, #tpu.memory_space<vmem>>, %arg8: memref<8x32xf32, #tpu.memory_space<vmem>>) attributes {dimension_semantics = [#tpu.dimension_semantics<parallel>], iteration_bounds = array<i64: 1>, scalar_prefetch = 0 : i64, scratch_operands = 0 : i64, tpu.core_type = #tpu.core_type<tc>, window_params = [{transform_indices = @transform_0, window_bounds = array<i64: 8, 16>}, {transform_indices = @transform_1, window_bounds = array<i64: 8, 32>}, {transform_indices = @transform_2, window_bounds = array<i64: 8, 32>}, {pipeline_mode = #tpu.pipeline_mode<synchronous>, transform_indices = @transform_3, window_bounds = array<i64: 16, 128>}, {pipeline_mode = #tpu.pipeline_mode<synchronous>, transform_indices = @transform_4, window_bounds = array<i64: 32, 128>}, {pipeline_mode = #tpu.pipeline_mode<synchronous>, transform_indices = @transform_5, window_bounds = array<i64: 1, 128>}, {transform_indices = @transform_6, window_bounds = array<i64: 8, 32>}, {transform_indices = @transform_7, window_bounds = array<i64: 8, 32>}]} {
    %c0 = arith.constant 0 : index
    %c0_0 = arith.constant 0 : index
    %0 = vector.load %arg1[%c0, %c0_0] : memref<8x16xf32, #tpu.memory_space<vmem>>, vector<8x16xf32>
    %1 = arith.truncf %0 : vector<8x16xf32> to vector<8x16xbf16>
    %c0_1 = arith.constant 0 : index
    %c0_2 = arith.constant 0 : index
    %2 = vector.load %arg4[%c0_1, %c0_2] : memref<16x128xbf16, #tpu.memory_space<vmem>>, vector<16x128xbf16>
    %cst = arith.constant dense<0.000000e+00> : vector<8x128xf32>
    %3 = tpu.matmul %1, %2, %cst {dimension_numbers = #tpu.dot_dimension_numbers<[1], [0], [0], [1], [0, 0, 1, 1], [], []>} : vector<8x16xbf16>, vector<16x128xbf16>, vector<8x128xf32> -> vector<8x128xf32>
    %c0_3 = arith.constant 0 : index
    %c0_4 = arith.constant 0 : index
    %4 = vector.load %arg2[%c0_3, %c0_4] : memref<8x32xf32, #tpu.memory_space<vmem>>, vector<8x32xf32>
    %5 = arith.truncf %4 : vector<8x32xf32> to vector<8x32xbf16>
    %c0_5 = arith.constant 0 : index
    %c0_6 = arith.constant 0 : index
    %6 = vector.load %arg5[%c0_5, %c0_6] : memref<32x128xbf16, #tpu.memory_space<vmem>>, vector<32x128xbf16>
    %cst_7 = arith.constant dense<0.000000e+00> : vector<8x128xf32>
    %7 = tpu.matmul %5, %6, %cst_7 {dimension_numbers = #tpu.dot_dimension_numbers<[1], [0], [0], [1], [0, 0, 1, 1], [], []>} : vector<8x32xbf16>, vector<32x128xbf16>, vector<8x128xf32> -> vector<8x128xf32>
    %8 = arith.addf %3, %7 : vector<8x128xf32>
    %c0_8 = arith.constant 0 : index
    %c0_9 = arith.constant 0 : index
    %9 = vector.load %arg6[%c0_8, %c0_9] : memref<1x128xf32, #tpu.memory_space<vmem>>, vector<1x128xf32>
    %10 = vector.broadcast %9 : vector<1x128xf32> to vector<8x128xf32>
    %11 = arith.addf %8, %10 : vector<8x128xf32>
    %12 = tpu.iota {dimensions = array<i32: 1>} : vector<8x128xi32>
    %c96_i32 = arith.constant 96 : i32
    %13 = vector.broadcast %c96_i32 : i32 to vector<8x128xi32>
    %14 = arith.cmpi slt, %12, %13 : vector<8x128xi32>
    %cst_10 = arith.constant 5.000000e-01 : f32
    %15 = vector.broadcast %cst_10 : f32 to vector<8x128xf32>
    %16 = arith.mulf %15, %11 : vector<8x128xf32>
    %17 = arith.select %14, %16, %11 : vector<8x128xi1>, vector<8x128xf32>
    %18 = math.tanh %17 : vector<8x128xf32>
    %cst_11 = arith.constant 5.000000e-01 : f32
    %19 = vector.broadcast %cst_11 : f32 to vector<8x128xf32>
    %20 = arith.mulf %19, %18 : vector<8x128xf32>
    %cst_12 = arith.constant 5.000000e-01 : f32
    %21 = vector.broadcast %cst_12 : f32 to vector<8x128xf32>
    %22 = arith.addf %20, %21 : vector<8x128xf32>
    %23 = arith.select %14, %22, %18 : vector<8x128xi1>, vector<8x128xf32>
    %24 = vector.extract_strided_slice %23 {offsets = [0, 0], sizes = [8, 32], strides = [1, 1]} : vector<8x128xf32> to vector<8x32xf32>
    %25 = vector.extract_strided_slice %23 {offsets = [0, 32], sizes = [8, 32], strides = [1, 1]} : vector<8x128xf32> to vector<8x32xf32>
    %26 = vector.extract_strided_slice %23 {offsets = [0, 64], sizes = [8, 32], strides = [1, 1]} : vector<8x128xf32> to vector<8x32xf32>
    %27 = vector.extract_strided_slice %23 {offsets = [0, 96], sizes = [8, 32], strides = [1, 1]} : vector<8x128xf32> to vector<8x32xf32>
    %c0_13 = arith.constant 0 : index
    %c0_14 = arith.constant 0 : index
    %28 = vector.load %arg3[%c0_13, %c0_14] : memref<8x32xf32, #tpu.memory_space<vmem>>, vector<8x32xf32>
    %29 = arith.mulf %25, %28 : vector<8x32xf32>
    %30 = arith.mulf %24, %27 : vector<8x32xf32>
    %31 = arith.addf %29, %30 : vector<8x32xf32>
    %32 = math.tanh %31 : vector<8x32xf32>
    %33 = arith.mulf %26, %32 : vector<8x32xf32>
    %c0_15 = arith.constant 0 : index
    %c0_16 = arith.constant 0 : index
    %34 = vector.load %arg7[%c0_15, %c0_16] : memref<8x32xf32, #tpu.memory_space<vmem>>, vector<8x32xf32>
    tpu.vector_store %arg7[%c0_15, %c0_16], %33 {strides = array<i32>} : memref<8x32xf32, #tpu.memory_space<vmem>>, vector<8x32xf32>,
    %c0_17 = arith.constant 0 : index
    %c0_18 = arith.constant 0 : index
    %35 = vector.load %arg8[%c0_17, %c0_18] : memref<8x32xf32, #tpu.memory_space<vmem>>, vector<8x32xf32>
    tpu.vector_store %arg8[%c0_17, %c0_18], %31 {strides = array<i32>} : memref<8x32xf32, #tpu.memory_space<vmem>>, vector<8x32xf32>,
    return
  }
  func.func @transform_0(%arg0: i32) -> (i32, i32) {
    %c0_i32 = arith.constant 0 : i32
    %c0_i32_0 = arith.constant 0 : i32
    return %arg0, %c0_i32 : i32, i32
  }
  func.func @transform_1(%arg0: i32) -> (i32, i32) {
    %c0_i32 = arith.constant 0 : i32
    %c0_i32_0 = arith.constant 0 : i32
    return %arg0, %c0_i32 : i32, i32
  }
  func.func @transform_2(%arg0: i32) -> (i32, i32) {
    %c0_i32 = arith.constant 0 : i32
    %c0_i32_0 = arith.constant 0 : i32
    return %arg0, %c0_i32 : i32, i32
  }
  func.func @transform_3(%arg0: i32) -> (i32, i32) {
    %c0_i32 = arith.constant 0 : i32
    %c0_i32_0 = arith.constant 0 : i32
    %c0_i32_1 = arith.constant 0 : i32
    return %c0_i32, %c0_i32_0 : i32, i32
  }
  func.func @transform_4(%arg0: i32) -> (i32, i32) {
    %c0_i32 = arith.constant 0 : i32
    %c0_i32_0 = arith.constant 0 : i32
    %c0_i32_1 = arith.constant 0 : i32
    return %c0_i32, %c0_i32_0 : i32, i32
  }
  func.func @transform_5(%arg0: i32) -> (i32, i32) {
    %c0_i32 = arith.constant 0 : i32
    %c0_i32_0 = arith.constant 0 : i32
    %c0_i32_1 = arith.constant 0 : i32
    return %c0_i32, %c0_i32_0 : i32, i32
  }
  func.func @transform_6(%arg0: i32) -> (i32, i32) {
    %c0_i32 = arith.constant 0 : i32
    %c0_i32_0 = arith.constant 0 : i32
    return %arg0, %c0_i32 : i32, i32
  }
  func.func @transform_7(%arg0: i32) -> (i32, i32) {
    %c0_i32 = arith.constant 0 : i32
    %c0_i32_0 = arith.constant 0 : i32
    return %arg0, %c0_i32 : i32, i32
  }
}

</mosaic_0001>

<bundles_post_ra>
// kernel: lstm_cell.1
= control target key start
LH: loop header
LB: loop body
LE: loop exit
PB: predicated region body
PF: predicated region fallthrough
CT: control target
= control target key end

     0   :  { %13 = vsyncpa [#allocation3], 0  ;;  %v308_v1 = vmov 0.0   ;;  %vm309_vm0 = vmmov 0   ;;  %vm100_vm1 = vcmask 130048   ;;  %s403_s0 = inlined_call_operand.vmem [shape: f32[8,16], index: 0, kind: input, shape index: {}]   ;;  %s404_s1 = inlined_call_operand.vmem [shape: f32[8,32], index: 1, kind: input, shape index: {}]   ;;  %s405_s2 = inlined_call_operand.vmem [shape: f32[8,32], index: 2, kind: input, shape index: {}]   ;;  %s406_s3 = inlined_call_operand.vmem [shape: bf16[16,128], index: 3, kind: input, shape index: {}]   ;;  %s407_s4 = inlined_call_operand.vmem [shape: bf16[32,128], index: 4, kind: input, shape index: {}]   ;;  %s408_s5 = inlined_call_operand.vmem [shape: f32[1,128], index: 5, kind: input, shape index: {}]   ;;  %s409_s6 = inlined_call_operand.hbm [shape: f32[8,32], index: 6, kind: output, shape index: {0}]   ;;  %s410_s7 = inlined_call_operand.hbm [shape: f32[8,32], index: 7, kind: output, shape index: {1}]  }
   0x1   :  { %v253_v0 = vld [vmem:[%s407_s4] sm:$0xff]   ;;  %232 = vmatprep.subr.bf16.mxu0 %v308_v1  ;;  %240 = vmatprep.subr.bf16.mxu1 %v308_v1  ;;  %v255_v3 = vld [vmem:[%s407_s4 + $0x8] sm:$0xff]  }
   0x2   :  { %v254_v2 = vld [vmem:[%s406_s3] sm:$0xff]   ;;  %233 = vmatpush3.bf16.msra.mxu0 %v253_v0  ;;  %242 = vmatprep.mubr.msk.bf16.mxu1 %vm309_vm0, %v308_v1 }
   0x3   :  { %241 = vmatpush3.bf16.msra.mxu1 %v254_v2  ;;  %234 = vmatprep.subr.bf16.mxu0 %v308_v1  ;;  %v28_v4 = vld [vmem:[%s403_s0] sm:$0xff] }
   0x4   :  { %v32_v5 = vld [vmem:[%s404_s1] sm:$0xff] }
   0x5   :  { %14 = vsyncpa [#allocation5], 0  ;;  %v29_v6 = vpack.c.bf16 %v28_v4, %v28_v4  ;;  %236 = vmatprep.mubr.msk.bf16.mxu0 %vm309_vm0, %v308_v1  ;;  %v33_v7 = vpack.c.bf16 %v32_v5, %v32_v5  ;;  %vm50_vm2 = vcmask 261120   ;;  %v152_v8 = vlaneseq  ;;  %v226_v13 = vld [vmem:[%s408_s5] ss:$0 sm:$0xff]  ;;  %s310_s1 = smov 32  }
   0x6   :  { %235 = vmatpush3.bf16.msra.mxu0 %v255_v3  ;;  %v161_v27 = vld [vmem:[%s405_s2] sm:$0xff]  ;;  %s311_s5 = smov 96   ;;  %s312_s12 = smov [#allocation4]  }
   0x7   :  { %243 = vmatmul.mubr.msk.bf16.vlgmr.msra.gmra.mrb[0].mxu1 %vm100_vm1, %v29_v6  ;;  %v153_v15 = vand.u32 127, %v152_v8  ;;  %s209_s13 = sshll.u32 %s312_s12, 4  ;;  %s313_s14 = smov 64   ;;  %s210_s13 = int_to_ptr.vmem [resolvable:$true] %s209_s13 }
   0x8   :  { %s260_s2 = scalar_lea.vmem %s210_s13, 128  ;;  %p265_p1 = scmp.lt.s32.totalorder %s210_s13, %s210_s13 }
   0x9   :  { %237 = vmatmul.mubr.msk.bf16.vlgmr.msra.gmra.mrb[0].mxu0 %vm50_vm2, %v33_v7  ;;  %vm154_vm3 = vcmp.lt.s32.totalorder %v153_v15, 96  ;;  %p261_p0 = scmp.ne.s32.totalorder %s210_s13, %s260_s2  ;;  %p266_p2 = scmp.lt.s32.totalorder %s260_s2, %s260_s2 }
   0xb   :  { %p267_p3 = por %p266_p2, %p265_p1 }
   0xd   :  { %p268_p4 = pnand %p267_p3, %p261_p0 }
  0xda   :  { %v138_v9 = vpop.f32.mrb[0].mxu1 }
  0xdb   :  { %v244_v10 = vpop.f32.mrb[1].mxu1 }
  0xdc   :  { %v141_v11 = vpop.f32.mrb[2].mxu1  ;;  %v88_v12 = vpop.f32.mrb[0].mxu0 }
  0xdd   :  { %v245_v14 = vpop.f32.mrb[3].mxu1  ;;  %v139_v16 = vadd.f32 %v138_v9, %v88_v12  ;;  %v238_v17 = vpop.f32.mrb[1].mxu0 }
  0xde   :  { %v91_v18 = vpop.f32.mrb[2].mxu0 }
  0xdf   :  { %v151_v19 = vadd.f32 %v226_v13, %v139_v16  ;;  %v239_v20 = vpop.f32.mrb[3].mxu0 }
  0xe1   :  { %v155_v21 = vmul.f32 0.5, %v151_v19 }
  0xe3   :  { %v156_v22 = vsel %vm154_vm3, %v155_v21, %v151_v19 }
  0xe4   :  { %256 = vtanh.f32 %v156_v22 }
  0xee   :  { %v257_v23 = vpop.eup %256 }
  0xef   :  { %v158_v24 = vmul.f32 0.5, %v257_v23 }
  0xf1   :  { %v159_v25 = vadd.f32 0.5, %v158_v24 }
  0xf3   :  { %v160_v26 = vsel %vm154_vm3, %v159_v25, %v257_v23 }
  0xf4   :  { %168 = vrot.lane.b32.xlu0 %v160_v26, %s310_s1 }
  0xf8   :  { %163 = vrot.lane.b32.xlu0 %v161_v27, %s310_s1 }
 0x166   :  { %v169_v28 = vpop.permute.xlu0 %168 }
 0x167   :  { %v171_v29 = vmul.f32 %v169_v28, %v160_v26 }
 0x169   :  { %173 = vrot.lane.b32.xlu1 %v171_v29, %s310_s1 }
 0x16a   :  { %v164_v30 = vpop.permute.xlu0 %163 }
 0x16b   :  { %v166_v31 = vmul.f32 %v164_v30, %v160_v26 }
 0x1db   :  { %v174_v32 = vpop.permute.xlu1 %173 }
 0x1dc   :  { %v176_v33 = vadd.f32 %v174_v32, %v166_v31 }
 0x1de   :  { %258 = vtanh.f32 %v176_v33 }
 0x1e8   :  { %v259_v34 = vpop.eup %258 }
 0x1e9   :  { %179 = vrot.lane.b32.xlu1 %v259_v34, %s310_s1 }
 0x1ed   :  { %189 = vrot.lane.b32.xlu1 %v176_v33, %s311_s5 }
 0x25b   :  { %v180_v35 = vpop.permute.xlu1 %179 }
 0x25c   :  { %v182_v36 = vmul.f32 %v180_v35, %v160_v26 }
 0x25e   :  { %184 = vrot.lane.b32.xlu0 %v182_v36, %s313_s14 }
 0x25f   :  { %v190_v37 = vpop.permute.xlu1 %189 }
 0x260   :  { %192 = vst.msk [vmem:[#allocation4] sm:$0xff] %vm50_vm2, %v190_v37 }
 0x261   :  { %271 = shalt.err (!%p268_p4)
}
 0x262   :  { %s272_s17 = scalar_lea.hbm %s410_s7, 128 }
 0x263   :  { %p273_p5 = scmp.ne.s32.totalorder %s410_s7, %s272_s17  ;;  %p276_p6 = scmp.lt.u32.totalorder %s272_s17, %s410_s7 }
 0x265   :  { %p278_p7 = pnand %p276_p6, %p273_p5 }
 0x267   :  { %281 = shalt.err (!%p278_p7)
}
 0x268   :  { %212 = dma.vmem_to_hbm [thread:$0]  %s210_s13, 128, %s410_s7, [#allocation5]  }
 0x269   :  { %s314_s24 = smov [#allocation2]  }
 0x26a   :  { %s199_s25 = sshll.u32 %s314_s24, 4  ;;  %s200_s25 = int_to_ptr.vmem [resolvable:$true] %s199_s25 }
 0x26b   :  { %s282_s26 = scalar_lea.vmem %s200_s25, 128  ;;  %p287_p9 = scmp.lt.s32.totalorder %s200_s25, %s200_s25 }
 0x26c   :  { %p283_p8 = scmp.ne.s32.totalorder %s200_s25, %s282_s26  ;;  %p288_p10 = scmp.lt.s32.totalorder %s282_s26, %s282_s26 }
 0x26e   :  { %p289_p11 = por %p288_p10, %p287_p9 }
 0x270   :  { %p290_p12 = pnand %p289_p11, %p283_p8 }
 0x2d0   :  { %v185_v38 = vpop.permute.xlu0 %184 }
 0x2d1   :  { %187 = vst.msk [vmem:[#allocation2] sm:$0xff] %vm50_vm2, %v185_v38 }
 0x2d2   :  { %293 = shalt.err (!%p290_p12)
}
 0x2d3   :  { %s294_s29 = scalar_lea.hbm %s409_s6, 128 }
 0x2d4   :  { %p295_p13 = scmp.ne.s32.totalorder %s409_s6, %s294_s29  ;;  %p298_p0 = scmp.lt.u32.totalorder %s294_s29, %s409_s6 }
 0x2d6   :  { %p300_p1 = pnand %p298_p0, %p295_p13 }
 0x2d8   :  { %303 = shalt.err (!%p300_p1)
}
 0x2d9   :  { %202 = dma.vmem_to_hbm [thread:$0]  %s200_s25, 128, %s409_s6, [#allocation3]  }
 0x2da   :  { %304 = dma.done.wait [#allocation3], 128  }
 0x2db   :  { %305 = vsyncadd [#allocation3], 4294967168 }
 0x2dc   :  { %306 = dma.done.wait [#allocation5], 128  }
 0x2dd   :  { %307 = vsyncadd [#allocation5], 4294967168 }
 0x2de   :  { %219 = vsyncpa [#allocation3], 1 }
 0x2df   :  { %220 = vsyncpa [#allocation5], 1 }

</bundles_post_ra>
